<compile_context>
chip_gen: v6e
topology: v6e:2x2x1
jax: 0.10.0
libtpu: 0.0.40
codegen_flags: <defaults>
</compile_context>

<pallas_src>
import jax
import jax.numpy as jnp
from jax.experimental import pallas as pl
from jax.experimental.pallas import tpu as pltpu

LANE = 128
# Budget for the double-buffered input + output spatial tiles per grid step.
# Kept well under v7x's 32 MiB default scoped VMEM (64 MiB physical); v5e/v6e
# (128 MiB VMEM) simply get extra headroom.
_VMEM_TILE_BUDGET = 24 * 1024 * 1024


def _round_down_lane(n):
    return max(LANE, (n // LANE) * LANE)


def _outconv_vpu_kernel(w_ref, b_ref, x_ref, o_ref):
    """Tiny-channel path: unrolled scalar-broadcast MACs on the VPU.

    w_ref: (Cout, Cin) f32 in SMEM (cheap scalar reads)
    b_ref: (Cout,)     f32 in SMEM
    x_ref: (Cin, thw)  VMEM tile, lane-dense
    o_ref: (Cout, thw) VMEM tile, lane-dense
    """
    cout, cin = w_ref.shape
    x = x_ref[...]
    rows = []
    for o in range(cout):
        acc = w_ref[o, 0] * x[0:1, :].astype(jnp.float32)
        for c in range(1, cin):
            acc = acc + w_ref[o, c] * x[c:c + 1, :].astype(jnp.float32)
        rows.append(acc + b_ref[o])
    o_ref[...] = jnp.concatenate(rows, axis=0).astype(o_ref.dtype)


def _outconv_mxu_kernel(w_ref, b_ref, x_ref, o_ref):
    """General path: channel matmul on the MXU with f32 accumulation.

    w_ref: (Cout, Cin) VMEM (resident), b_ref: (Cout, 1) f32 VMEM (resident)
    x_ref: (Cin, thw) VMEM tile, o_ref: (Cout, thw) VMEM tile.
    """
    acc = jnp.dot(w_ref[...], x_ref[...], preferred_element_type=jnp.float32)
    o_ref[...] = (acc + b_ref[...]).astype(o_ref.dtype)


def outconv_forward(x_nchw, weight, bias, *, tile_hw=32768, cast_to_bf16=False):
    """1x1 conv forward, matching torch.nn.Conv2d(Cin, Cout, kernel_size=1).

    x_nchw : (N, Cin, H, W)
    weight : (Cout, Cin, 1, 1)   (PyTorch Conv2d layout)
    bias   : (Cout,)
    returns: (N, Cout, H, W) in x_nchw.dtype
    """
    N, Cin, H, W = x_nchw.shape
    Cout = weight.shape[0]
    HW = H * W
    out_dtype = x_nchw.dtype

    use_vpu = (Cin <= 8) and (Cout <= 8)

    # bf16 inputs only on the MXU path (real channel counts); accumulation and
    # output stay f32 so only input rounding differs from the f32 reference.
    in_dtype = jnp.bfloat16 if (cast_to_bf16 and not use_vpu) else x_nchw.dtype

    x3 = x_nchw.reshape(N, Cin, HW).astype(in_dtype)  # free view (+ optional cast)

    # --- Spatial tile selection --------------------------------------------
    # Big lane-dense tiles (multiple of 128) so each grid step moves enough
    # bytes to amortize per-step overhead, capped by the double-buffered VMEM
    # budget.  The ragged tail tile is handled by Pallas partial-block
    # masking: no jnp.pad copy, no output slice.
    in_isz = jnp.dtype(in_dtype).itemsize
    out_isz = jnp.dtype(out_dtype).itemsize
    bytes_per_lane = 2 * (Cin * in_isz + Cout * out_isz)  # 2x = double-buffered
    max_thw_vmem = _round_down_lane(_VMEM_TILE_BUDGET // bytes_per_lane)
    thw = min(_round_down_lane(tile_hw), max_thw_vmem)
    if HW <= thw:
        thw = HW  # full-extent block along the last dim is always legal
    n_tiles = pl.cdiv(HW, thw)
    # NOTE(v7x): grid = (N, n_tiles), both axes "parallel"; for typical U-Net
    # shapes N * n_tiles >= 2 so both TensorCores get work.

    if use_vpu:
        kernel = _outconv_vpu_kernel
        w_arg = weight.reshape(Cout, Cin).astype(jnp.float32)
        b_arg = bias.astype(jnp.float32)
        w_spec = pl.BlockSpec(memory_space=pltpu.MemorySpace.SMEM)
        b_spec = pl.BlockSpec(memory_space=pltpu.MemorySpace.SMEM)
    else:
        kernel = _outconv_mxu_kernel
        w_arg = weight.reshape(Cout, Cin).astype(in_dtype)
        b_arg = bias.reshape(Cout, 1).astype(jnp.float32)
        w_spec = pl.BlockSpec((Cout, Cin), lambda n, t: (0, 0))  # resident
        b_spec = pl.BlockSpec((Cout, 1), lambda n, t: (0, 0))    # resident

    cost = pl.CostEstimate(
        flops=2 * N * HW * Cin * Cout,
        transcendentals=0,
        bytes_accessed=(N * Cin * HW * in_isz + N * Cout * HW * out_isz
                        + Cin * Cout * 4 + Cout * 4),
    )

    # Scoped VMEM: double-buffered tiles (already inside budget) + headroom,
    # capped well under v7x's 64 MiB physical VMEM.
    vmem_limit = int(min(48 << 20, max(32 << 20, 2 * bytes_per_lane * thw)))

    out3 = pl.pallas_call(
        kernel,
        out_shape=jax.ShapeDtypeStruct((N, Cout, HW), out_dtype),
        grid_spec=pltpu.PrefetchScalarGridSpec(
            num_scalar_prefetch=0,
            grid=(N, n_tiles),
            in_specs=[
                w_spec,
                b_spec,
                pl.BlockSpec((None, Cin, thw), lambda n, t: (n, 0, t)),
            ],
            out_specs=pl.BlockSpec((None, Cout, thw), lambda n, t: (n, 0, t)),
        ),
        compiler_params=pltpu.CompilerParams(
            dimension_semantics=("parallel", "parallel"),
            vmem_limit_bytes=vmem_limit),
        cost_estimate=cost,
    )(w_arg, b_arg, x3)

    return out3.reshape(N, Cout, H, W)


def _reference(x, weight, bias):
    Cout, Cin = weight.shape[0], weight.shape[1]
    return (jnp.einsum("nchw,oc->nohw", x, weight.reshape(Cout, Cin))
            + bias[None, :, None, None])


if __name__ == "__main__":
    key = jax.random.PRNGKey(0)

    def make_params(k, cin, cout):
        kw, kb = jax.random.split(k)
        bound = 1.0 / (cin ** 0.5)
        w = jax.random.uniform(kw, (cout, cin, 1, 1), jnp.float32, -bound, bound)
        b = jax.random.uniform(kb, (cout,), jnp.float32, -bound, bound)
        return w, b

    k0, k1, k2, k3, k4, k5 = jax.random.split(key, 6)

    # 1) Main small case (tiny channels -> VPU path, single full-extent tile).
    N, Cin, H, W, Cout = 2, 4, 16, 16, 3
    x = jax.random.normal(k0, (N, Cin, H, W), dtype=jnp.float32)
    w, b = make_params(k1, Cin, Cout)
    y = jax.block_until_ready(outconv_forward(x, w, b))
    assert y.shape == (N, Cout, H, W)
    assert jnp.allclose(y, _reference(x, w, b), atol=1e-5, rtol=1e-5)

    # 2) Ragged spatial extent with a small forced tile: exercises the
    #    Pallas partial-block (masked tail tile) path, no pad / slice copies.
    N2, H2, W2 = 1, 15, 20  # HW = 300, thw = 128 -> 3 tiles, last one partial
    x2 = jax.random.normal(k2, (N2, Cin, H2, W2), dtype=jnp.float32)
    w2, b2 = make_params(k3, Cin, Cout)
    y2 = jax.block_until_ready(outconv_forward(x2, w2, b2, tile_hw=128))
    assert y2.shape == (N2, Cout, H2, W2)
    assert jnp.allclose(y2, _reference(x2, w2, b2), atol=1e-5, rtol=1e-5)

    # 3) Larger channel counts -> MXU matmul path.
    N3, Cin3, H3, W3, Cout3 = 2, 32, 8, 8, 16
    x3 = jax.random.normal(k4, (N3, Cin3, H3, W3), dtype=jnp.float32)
    w3, b3 = make_params(k5, Cin3, Cout3)
    y3 = jax.block_until_ready(outconv_forward(x3, w3, b3))
    assert y3.shape == (N3, Cout3, H3, W3)
    assert jnp.allclose(y3, _reference(x3, w3, b3), atol=1e-5, rtol=1e-5)

    print("KERNEL_OK")
</pallas_src>

<mosaic_0001>
module attributes {stable_mosaic.version = 11 : i64} {
  func.func @_outconv_vpu_kernel(%arg0: i32, %arg1: i32, %arg2: memref<3x4xf32, #tpu.memory_space<smem>>, %arg3: memref<3xf32, #tpu.memory_space<smem>>, %arg4: memref<1x4x256xf32, #tpu.memory_space<vmem>>, %arg5: memref<1x3x256xf32, #tpu.memory_space<vmem>>) attributes {dimension_semantics = [#tpu.dimension_semantics<parallel>, #tpu.dimension_semantics<parallel>], iteration_bounds = array<i64: 2, 1>, scalar_prefetch = 0 : i64, scratch_operands = 0 : i64, tpu.core_type = #tpu.core_type<tc>, window_params = [{transform_indices = @transform_0, window_bounds = array<i64: 3, 4>}, {transform_indices = @transform_1, window_bounds = array<i64: 3>}, {transform_indices = @transform_2, window_bounds = array<i64: 1, 4, 256>}, {transform_indices = @transform_3, window_bounds = array<i64: 1, 3, 256>}]} {
    %c0 = arith.constant 0 : index
    %c0_0 = arith.constant 0 : index
    %c0_1 = arith.constant 0 : index
    %0 = vector.load %arg4[%c0, %c0_0, %c0_1] : memref<1x4x256xf32, #tpu.memory_space<vmem>>, vector<1x4x256xf32>
    %1 = vector.shape_cast %0 : vector<1x4x256xf32> to vector<4x256xf32>
    %c0_2 = arith.constant 0 : index
    %c0_3 = arith.constant 0 : index
    %2 = memref.load %arg2[%c0_2, %c0_3] : memref<3x4xf32, #tpu.memory_space<smem>>
    %3 = vector.extract_strided_slice %1 {offsets = [0, 0], sizes = [1, 256], strides = [1, 1]} : vector<4x256xf32> to vector<1x256xf32>
    %4 = vector.broadcast %2 : f32 to vector<1x256xf32>
    %5 = arith.mulf %4, %3 : vector<1x256xf32>
    %c0_4 = arith.constant 0 : index
    %c1 = arith.constant 1 : index
    %6 = memref.load %arg2[%c0_4, %c1] : memref<3x4xf32, #tpu.memory_space<smem>>
    %7 = vector.extract_strided_slice %1 {offsets = [1, 0], sizes = [1, 256], strides = [1, 1]} : vector<4x256xf32> to vector<1x256xf32>
    %8 = vector.broadcast %6 : f32 to vector<1x256xf32>
    %9 = arith.mulf %8, %7 : vector<1x256xf32>
    %10 = arith.addf %5, %9 : vector<1x256xf32>
    %c0_5 = arith.constant 0 : index
    %c2 = arith.constant 2 : index
    %11 = memref.load %arg2[%c0_5, %c2] : memref<3x4xf32, #tpu.memory_space<smem>>
    %12 = vector.extract_strided_slice %1 {offsets = [2, 0], sizes = [1, 256], strides = [1, 1]} : vector<4x256xf32> to vector<1x256xf32>
    %13 = vector.broadcast %11 : f32 to vector<1x256xf32>
    %14 = arith.mulf %13, %12 : vector<1x256xf32>
    %15 = arith.addf %10, %14 : vector<1x256xf32>
    %c0_6 = arith.constant 0 : index
    %c3 = arith.constant 3 : index
    %16 = memref.load %arg2[%c0_6, %c3] : memref<3x4xf32, #tpu.memory_space<smem>>
    %17 = vector.extract_strided_slice %1 {offsets = [3, 0], sizes = [1, 256], strides = [1, 1]} : vector<4x256xf32> to vector<1x256xf32>
    %18 = vector.broadcast %16 : f32 to vector<1x256xf32>
    %19 = arith.mulf %18, %17 : vector<1x256xf32>
    %20 = arith.addf %15, %19 : vector<1x256xf32>
    %c0_7 = arith.constant 0 : index
    %21 = memref.load %arg3[%c0_7] : memref<3xf32, #tpu.memory_space<smem>>
    %22 = vector.broadcast %21 : f32 to vector<1x256xf32>
    %23 = arith.addf %20, %22 : vector<1x256xf32>
    %c1_8 = arith.constant 1 : index
    %c0_9 = arith.constant 0 : index
    %24 = memref.load %arg2[%c1_8, %c0_9] : memref<3x4xf32, #tpu.memory_space<smem>>
    %25 = vector.extract_strided_slice %1 {offsets = [0, 0], sizes = [1, 256], strides = [1, 1]} : vector<4x256xf32> to vector<1x256xf32>
    %26 = vector.broadcast %24 : f32 to vector<1x256xf32>
    %27 = arith.mulf %26, %25 : vector<1x256xf32>
    %c1_10 = arith.constant 1 : index
    %c1_11 = arith.constant 1 : index
    %28 = memref.load %arg2[%c1_10, %c1_11] : memref<3x4xf32, #tpu.memory_space<smem>>
    %29 = vector.extract_strided_slice %1 {offsets = [1, 0], sizes = [1, 256], strides = [1, 1]} : vector<4x256xf32> to vector<1x256xf32>
    %30 = vector.broadcast %28 : f32 to vector<1x256xf32>
    %31 = arith.mulf %30, %29 : vector<1x256xf32>
    %32 = arith.addf %27, %31 : vector<1x256xf32>
    %c1_12 = arith.constant 1 : index
    %c2_13 = arith.constant 2 : index
    %33 = memref.load %arg2[%c1_12, %c2_13] : memref<3x4xf32, #tpu.memory_space<smem>>
    %34 = vector.extract_strided_slice %1 {offsets = [2, 0], sizes = [1, 256], strides = [1, 1]} : vector<4x256xf32> to vector<1x256xf32>
    %35 = vector.broadcast %33 : f32 to vector<1x256xf32>
    %36 = arith.mulf %35, %34 : vector<1x256xf32>
    %37 = arith.addf %32, %36 : vector<1x256xf32>
    %c1_14 = arith.constant 1 : index
    %c3_15 = arith.constant 3 : index
    %38 = memref.load %arg2[%c1_14, %c3_15] : memref<3x4xf32, #tpu.memory_space<smem>>
    %39 = vector.extract_strided_slice %1 {offsets = [3, 0], sizes = [1, 256], strides = [1, 1]} : vector<4x256xf32> to vector<1x256xf32>
    %40 = vector.broadcast %38 : f32 to vector<1x256xf32>
    %41 = arith.mulf %40, %39 : vector<1x256xf32>
    %42 = arith.addf %37, %41 : vector<1x256xf32>
    %c1_16 = arith.constant 1 : index
    %43 = memref.load %arg3[%c1_16] : memref<3xf32, #tpu.memory_space<smem>>
    %44 = vector.broadcast %43 : f32 to vector<1x256xf32>
    %45 = arith.addf %42, %44 : vector<1x256xf32>
    %c2_17 = arith.constant 2 : index
    %c0_18 = arith.constant 0 : index
    %46 = memref.load %arg2[%c2_17, %c0_18] : memref<3x4xf32, #tpu.memory_space<smem>>
    %47 = vector.extract_strided_slice %1 {offsets = [0, 0], sizes = [1, 256], strides = [1, 1]} : vector<4x256xf32> to vector<1x256xf32>
    %48 = vector.broadcast %46 : f32 to vector<1x256xf32>
    %49 = arith.mulf %48, %47 : vector<1x256xf32>
    %c2_19 = arith.constant 2 : index
    %c1_20 = arith.constant 1 : index
    %50 = memref.load %arg2[%c2_19, %c1_20] : memref<3x4xf32, #tpu.memory_space<smem>>
    %51 = vector.extract_strided_slice %1 {offsets = [1, 0], sizes = [1, 256], strides = [1, 1]} : vector<4x256xf32> to vector<1x256xf32>
    %52 = vector.broadcast %50 : f32 to vector<1x256xf32>
    %53 = arith.mulf %52, %51 : vector<1x256xf32>
    %54 = arith.addf %49, %53 : vector<1x256xf32>
    %c2_21 = arith.constant 2 : index
    %c2_22 = arith.constant 2 : index
    %55 = memref.load %arg2[%c2_21, %c2_22] : memref<3x4xf32, #tpu.memory_space<smem>>
    %56 = vector.extract_strided_slice %1 {offsets = [2, 0], sizes = [1, 256], strides = [1, 1]} : vector<4x256xf32> to vector<1x256xf32>
    %57 = vector.broadcast %55 : f32 to vector<1x256xf32>
    %58 = arith.mulf %57, %56 : vector<1x256xf32>
    %59 = arith.addf %54, %58 : vector<1x256xf32>
    %c2_23 = arith.constant 2 : index
    %c3_24 = arith.constant 3 : index
    %60 = memref.load %arg2[%c2_23, %c3_24] : memref<3x4xf32, #tpu.memory_space<smem>>
    %61 = vector.extract_strided_slice %1 {offsets = [3, 0], sizes = [1, 256], strides = [1, 1]} : vector<4x256xf32> to vector<1x256xf32>
    %62 = vector.broadcast %60 : f32 to vector<1x256xf32>
    %63 = arith.mulf %62, %61 : vector<1x256xf32>
    %64 = arith.addf %59, %63 : vector<1x256xf32>
    %c2_25 = arith.constant 2 : index
    %65 = memref.load %arg3[%c2_25] : memref<3xf32, #tpu.memory_space<smem>>
    %66 = vector.broadcast %65 : f32 to vector<1x256xf32>
    %67 = arith.addf %64, %66 : vector<1x256xf32>
    %68 = tpu.concatenate %23, %45, %67 in 0 : vector<1x256xf32>, vector<1x256xf32>, vector<1x256xf32> -> vector<3x256xf32>
    %c0_26 = arith.constant 0 : index
    %c0_27 = arith.constant 0 : index
    %c0_28 = arith.constant 0 : index
    %69 = vector.load %arg5[%c0_26, %c0_27, %c0_28] : memref<1x3x256xf32, #tpu.memory_space<vmem>>, vector<1x3x256xf32>
    %70 = vector.shape_cast %69 : vector<1x3x256xf32> to vector<3x256xf32>
    %71 = vector.shape_cast %68 : vector<3x256xf32> to vector<1x3x256xf32>
    tpu.vector_store %arg5[%c0_26, %c0_27, %c0_28], %71 {strides = array<i32>} : memref<1x3x256xf32, #tpu.memory_space<vmem>>, vector<1x3x256xf32>,
    return
  }
  func.func @transform_0(%arg0: i32, %arg1: i32) -> (i32, i32) {
    %c0_i32 = arith.constant 0 : i32
    %c0_i32_0 = arith.constant 0 : i32
    %c0_i32_1 = arith.constant 0 : i32
    return %c0_i32, %c0_i32_0 : i32, i32
  }
  func.func @transform_1(%arg0: i32, %arg1: i32) -> i32 {
    %c0_i32 = arith.constant 0 : i32
    %c0_i32_0 = arith.constant 0 : i32
    return %c0_i32 : i32
  }
  func.func @transform_2(%arg0: i32, %arg1: i32) -> (i32, i32, i32) {
    %c0_i32 = arith.constant 0 : i32
    %c0_i32_0 = arith.constant 0 : i32
    return %arg0, %c0_i32, %arg1 : i32, i32, i32
  }
  func.func @transform_3(%arg0: i32, %arg1: i32) -> (i32, i32, i32) {
    %c0_i32 = arith.constant 0 : i32
    %c0_i32_0 = arith.constant 0 : i32
    return %arg0, %c0_i32, %arg1 : i32, i32, i32
  }
}

</mosaic_0001>

<bundles_post_ra>
// kernel: tpu_custom_call.1
= control target key start
LH: loop header
LB: loop body
LE: loop exit
PB: predicated region body
PF: predicated region fallthrough
CT: control target
= control target key end

     0   :  { %8 = vsyncpa [#allocation4], 0  ;;  %s895_s0 = inlined_call_operand.hbm [shape: f32[3,4], index: 0, kind: input, shape index: {}]   ;;  %s896_s1 = inlined_call_operand.vmem [shape: f32[3], index: 1, kind: input, shape index: {}]   ;;  %s897_s2 = inlined_call_operand.hbm [shape: f32[2,4,256], index: 2, kind: input, shape index: {}]   ;;  %s898_s3 = inlined_call_operand.vmem [shape: f32[2,3,256], index: 3, kind: output, shape index: {}]  }
   0x1   :  { %9 = vsyncpa [#allocation5], 0 }
   0x2   :  { %10 = vsyncpa [#allocation3], 0 }
   0x3   :  { %12 = vsyncpa [#allocation3 + $0x1], 0  ;;  %s750_s12 = smov 0   ;;  %s752_s13 = smov 0  }
   0x4   :  { %s754_s14 = smov 0   ;;  %s756_s15 = smov 0  }
   0x5   :  { %s758_s16 = smov 0   ;;  %s760_s17 = smov 0  }
   0x6 LB: > { %s496_s18 = sadd.s32 4294967295, %s725_s17   ;;  %p94_p0 = scmp.ne.s32.totalorder %s709_s13, %s705_s12  ;;  %s725_s17 = sphi %s760_s17, %s18_s17   ;;  %s721_s16 = sphi %s758_s16, %s909_s16   ;;  %s717_s15 = sphi %s756_s15, %s908_s15   ;;  %s713_s14 = sphi %s754_s14, %s907_s14   ;;  %s709_s13 = sphi %s752_s13, %s906_s13   ;;  %s705_s12 = sphi %s750_s12, %s905_s12  }
   0x7   : > { %p780_p1 = scmp.eq.s32.totalorder %s496_s18, 0  ;;  %p498_p2 = scmp.ge.s32.totalorder %s725_s17, 1 }
   0x8   : > { %p133_p3 = scmp.lt.s32.totalorder %s725_s17, 3  ;;  %s155_s24 = sshll.u32 %s896_s1, 4  ;;  %s156_s24 = int_to_ptr.vmem [resolvable:$true] %s155_s24 }
   0x9   : > { %p788_p4 = por %p780_p1, %p94_p0  ;;  %s30_s26 = sadd.s32 1, %s721_s16 }
   0xa   : > { %p792_p5 = pnand %p498_p2, %p133_p3  ;;  %p808_p8 = scmp.ge.s32.totalorder %s30_s26, 2 }
   0xb   : > { %s727_s28 = smov [#allocation2]   ;;  %s624_s4 = scalar_lea.vmem %s156_s24, 16 }
   0xc   : > { %p547_p6 = pneg %p792_p5  ;;  %p625_p9 = scmp.ne.s32.totalorder %s156_s24, %s624_s4 }
   0xd   : > { %p632_p13 = scmp.lt.s32.totalorder %s156_s24, %s156_s24  ;;  %p633_p0 = scmp.lt.s32.totalorder %s624_s4, %s624_s4 }
   0xe   : > { %p803_p7 = pnand %p547_p6, %p780_p1 }
   0xf   : > { %p634_p2 = por %p633_p0, %p632_p13 }
  0x10   : > { %550 = dma.hbm_to_smem (!%p803_p7), %s895_s0, 64, %s727_s28, [#allocation4]  }
  0x11   : > { %p626_p10 = pneg %p803_p7 }
  0x13   : > { %p627_p11 = pnand %p626_p10, %p625_p9 }
  0x15   : > { %p628_p12 = pneg %p627_p11 }
  0x17   : > { %p635_p3 = pnand %p634_p2, %p628_p12 }
  0x19   : > { %638 = shalt.err (!%p635_p3)
}
  0x1a   : > { %s728_s5 = smov [#allocation6]   ;;  %s911_s26 = smov (%p808_p8, %s30_s26), 0 }
  0x1b   : > { %553 = dma.vmem_to_smem (!%p803_p7), %s156_s24, 16, %s728_s5, [#allocation5]  }
  0x1c   : > { %s81_s6 = sadd.s32 1, %s713_s14  ;;  %p88_p6 = scmp.ne.s32.totalorder %s713_s14, %s709_s13 }
  0x1d   : > { %s76_s7 = ssub.s32 %s721_s16, %s911_s26  ;;  %p89_p9 = scmp.eq.s32.totalorder %s725_s17, 0 }
  0x1e   : > { %p79_p10 = scmp.eq.s32.totalorder %s76_s7, 0  ;;  %p560_p11 = scmp.lt.s32.totalorder %s725_s17, 2 }
  0x1f   : > { %p90_p12 = por %p89_p9, %p88_p6  ;;  %s166_s8 = sand.u32 1, %s713_s14  }
  0x20   : > { %s834_s9 = scalar_select %p79_p10, %s713_s14, %s81_s6  }
  0x21   : > { %s502_s10 = sshll.u32 %s166_s8, 3  ;;  %s535_s11 = sshll.u32 %s721_s16, 7 }
  0x22   : > { %s178_s22 = scalar_lea.hbm %s897_s2, %s535_s11  ;;  %s170_s23 = scalar_lea.vmem [#allocation7], %s502_s10 }
  0x23   : > { %s180_s24 = sshll.u32 %s170_s23, 4  ;;  %p840_p7 = pnand %p560_p11, %p90_p12  ;;  %s181_s24 = int_to_ptr.vmem [resolvable:$true] %s180_s24 }
  0x24   : > { %s167_s27 = scalar_lea.sflag [#allocation3], %s166_s8  ;;  %s652_s28 = scalar_lea.vmem %s181_s24, 128 }
  0x25   : > { %p641_p8 = pneg %p840_p7  ;;  %p653_p13 = scmp.ne.s32.totalorder %s181_s24, %s652_s28 }
  0x26   : > { %s729_s29 = smov [#allocation7]  }
  0x27   : > { %p655_p0 = pnand %p653_p13, %p641_p8  ;;  %s657_s30 = sshll.u32 %s729_s29, 4  ;;  %s658_s30 = int_to_ptr.vmem [resolvable:$false] %s657_s30 }
  0x28   : > { %s659_s4 = scalar_lea.vmem %s658_s30, 256  ;;  %p660_p3 = scmp.lt.s32.totalorder %s181_s24, %s658_s30 }
  0x29   : > { %p656_p2 = pneg %p655_p0  ;;  %p661_p6 = scmp.lt.s32.totalorder %s659_s4, %s652_s28 }
  0x2b   : > { %p662_p9 = por %p661_p6, %p660_p3 }
  0x2d   : > { %p663_p10 = pnand %p662_p9, %p656_p2 }
  0x2f   : > { %666 = shalt.err (!%p663_p10)
}
  0x30   : > { %557 = dma.hbm_to_vmem [thread:$0]  (!%p840_p7), %s178_s22, 128, %s181_s24, %s167_s27  }
  0x31   : > { %189 = sbr.rel (%p792_p5) target bundleno = 99 (0x63), region = 32 }
  0x36   : > { %692 = dma.done.wait (%p780_p1), [#allocation4], 64  }
  0x37   : > { %694 = vsyncadd (%p780_p1), [#allocation4], 4294967232 }
  0x38   : > { %696 = dma.done.wait (%p780_p1), [#allocation5], 16  }
  0x39   : > { %698 = vsyncadd (%p780_p1), [#allocation5], 4294967280  ;;  %s199_s5 = sand.u32 1, %s709_s13  }
  0x3a   : > { %s508_s6 = sshll.u32 %s199_s5, 3  ;;  %s200_s7 = scalar_lea.sflag [#allocation3], %s199_s5 }
  0x3b   : > { %s203_s8 = scalar_lea.vmem [#allocation7], %s508_s6 }
  0x3c   : > { %700 = dma.done.wait (%p788_p4), %s200_s7, 128  }
  0x3d   : > { %702 = vsyncadd (%p788_p4), %s200_s7, 4294967168 }
  0x3e   : > { %208 = sfence }
  0x3f   : > { %s243_s21 = sld [smem:[#allocation2]]  ;;  %v242_v0 = vld [vmem:[%s203_s8] sm:$0xff]  ;;  %v334_v17 = vlaneseq  ;;  %p233_p1 = scmp.lt.s32.totalorder %s717_s15, 1  ;;  %vm366_vm0 = vcmask 1040384   ;;  %vm369_vm1 = vcmask 1041408  }
  0x40   : > { %s511_s10 = sld [smem:[#allocation2 + $0x1]] }
  0x41   : > { %s513_s11 = sld [smem:[#allocation2 + $0x2]]  ;;  %v335_v29 = vshrl.u32 %v334_v17, 7  ;;  %s913_s15 = smov (!%p233_p1, %s717_s15), 1 }
  0x42   : > { %s515_s12 = sld [smem:[#allocation2 + $0x3]]  ;;  %s536_s4 = sshll.u32 %s913_s15, 3 }
  0x43   : > { %s863_s18 = sld [smem:[#allocation6]]  ;;  %v336_v44 = vsub.s32 0, %v335_v29  ;;  %v340_v45 = vsub.s32 4, %v335_v29  ;;  %s240_s7 = scalar_lea.vmem %s898_s3, %s536_s4 }
  0x44   : > { %s517_s19 = sld [smem:[#allocation2 + $0x80]] }
  0x45   : > { %v244_v1 = vstv %s243_s21  ;;  %s518_s22 = sld [smem:[#allocation2 + $0x81]] }
  0x46   : > { %v247_v2 = vstv %s511_s10  ;;  %v245_v3 = vmul.f32 %v244_v1, %v242_v0  ;;  %s520_s23 = sld [smem:[#allocation2 + $0x82]] }
  0x47   : > { %v248_v4 = vmul.f32 %v247_v2, %v242_v0  ;;  %v255_v5 = vstv %s513_s11  ;;  %s522_s24 = sld [smem:[#allocation2 + $0x83]] }
  0x48   : > { %v256_v7 = vmul.f32 %v255_v5, %v242_v0  ;;  %v263_v8 = vstv %s515_s12  ;;  %s865_s20 = sld [smem:[#allocation6 + $0x1]] }
  0x49   : > { %v512_v6 = vrot.slane %v248_v4, 9  ;;  %v264_v9 = vmul.f32 %v263_v8, %v242_v0  ;;  %s525_s25 = sld [smem:[#allocation2 + $0x100]]  ;;  %v271_v26 = vstv %s863_s18 }
  0x4a   : > { %v514_v11 = vrot.slane %v256_v7, 10  ;;  %v274_v12 = vstv %s517_s19  ;;  %s526_s27 = sld [smem:[#allocation2 + $0x101]] }
  0x4b   : > { %v253_v10 = vadd.f32 %v512_v6, %v245_v3  ;;  %v277_v13 = vstv %s518_s22  ;;  %s528_s28 = sld [smem:[#allocation2 + $0x102]]  ;;  %v275_v14 = vmul.f32 %v274_v12, %v242_v0  ;;  %v516_v19 = vrot.slane %v264_v9, 11 }
  0x4c   : > { %v278_v15 = vmul.f32 %v277_v13, %v242_v0  ;;  %v285_v16 = vstv %s520_s23  ;;  %s530_s29 = sld [smem:[#allocation2 + $0x103]] }
  0x4d   : > { %v261_v18 = vadd.f32 %v514_v11, %v253_v10  ;;  %v286_v20 = vmul.f32 %v285_v16, %v242_v0  ;;  %v293_v21 = vstv %s522_s24  ;;  %s868_s30 = sld [smem:[#allocation6 + $0x2]] }
  0x4e   : > { %v519_v22 = vrot.slane %v278_v15, 9  ;;  %v294_v23 = vmul.f32 %v293_v21, %v242_v0  ;;  %v301_v38 = vstv %s865_s20 }
  0x4f   : > { %v521_v24 = vrot.slane %v286_v20, 10  ;;  %v304_v25 = vstv %s525_s25  ;;  %v269_v30 = vadd.f32 %v516_v19, %v261_v18 }
  0x50   : > { %v283_v27 = vadd.f32 %v519_v22, %v275_v14  ;;  %v523_v28 = vrot.slane %v294_v23, 11  ;;  %v305_v31 = vmul.f32 %v304_v25, %v242_v0  ;;  %v307_v32 = vstv %s526_s27 }
  0x51   : > { %v315_v33 = vstv %s528_s28  ;;  %v308_v35 = vmul.f32 %v307_v32, %v242_v0  ;;  %v272_v43 = vadd.f32 %v271_v26, %v269_v30 }
  0x52   : > { %v291_v34 = vadd.f32 %v521_v24, %v283_v27  ;;  %v316_v36 = vmul.f32 %v315_v33, %v242_v0  ;;  %v323_v37 = vstv %s530_s29 }
  0x53   : > { %v324_v39 = vmul.f32 %v323_v37, %v242_v0  ;;  %v527_v41 = vrot.slane %v308_v35, 9  ;;  %v331_v50 = vstv %s868_s30  ;;  %v337_v51 = vrot.slane %v272_v43, %v336_v44 }
  0x54   : > { %v299_v40 = vadd.f32 %v523_v28, %v291_v34  ;;  %v529_v42 = vrot.slane %v316_v36, 10  ;;  %v341_v52 = vrot.slane %v272_v43, %v340_v45 }
  0x55   : > { %v313_v47 = vadd.f32 %v527_v41, %v305_v31  ;;  %v531_v48 = vrot.slane %v324_v39, 11 }
  0x56   : > { %v302_v46 = vadd.f32 %v301_v38, %v299_v40 }
  0x57   : > { %v321_v49 = vadd.f32 %v529_v42, %v313_v47 }
  0x58   : > { %v348_v53 = vrot.slane %v302_v46, %v336_v44  ;;  %v352_v54 = vrot.slane %v302_v46, %v340_v45 }
  0x59   : > { %v329_v55 = vadd.f32 %v531_v48, %v321_v49 }
  0x5a   : > { %v367_v57 = vsel %vm366_vm0, %v337_v51, %v348_v53  ;;  %v368_v58 = vsel %vm366_vm0, %v341_v52, %v352_v54 }
  0x5b   : > { %v332_v56 = vadd.f32 %v331_v50, %v329_v55 }
  0x5d   : > { %v359_v59 = vrot.slane %v332_v56, %v336_v44  ;;  %v363_v60 = vrot.slane %v332_v56, %v340_v45 }
  0x5f   : > { %v370_v61 = vsel %vm369_vm1, %v367_v57, %v359_v59  ;;  %v371_v62 = vsel %vm369_vm1, %v368_v58, %v363_v60 }
  0x60   : > { %v374_v63 = vcombine.low %v370_v61, %v371_v62 }
  0x62   : > { %376 = vst [vmem:[%s240_s7] sm:$0x77] %v374_v63 }
  0x63 PF: > { %s18_s17 = sadd.s32 1, %s725_s17   ;;  %s905_s12 = smov %s709_s13 }
  0x64   : > { %p15_p4 = scmp.ge.s32.totalorder %s18_s17, 4   ;;  %s906_s13 = smov %s713_s14 }
  0x65   : > { %s907_s14 = smov %s834_s9  ;;  %s908_s15 = smov %s721_s16 }
  0x66   : > { %s909_s16 = smov %s911_s26  ;;  %17 = sbr.rel (!%p15_p4) target bundleno = 6 (0x6), region = 82 }
  0x6b   :  { %407 = vsyncpa [#allocation3], 1 }
  0x6c   :  { %409 = vsyncpa [#allocation3 + $0x1], 1 }
  0x6d   :  { %410 = vsyncpa [#allocation4], 1 }
  0x6e   :  { %412 = vsyncpa [#allocation4 + $0x1], 1 }
  0x6f   :  { %413 = vsyncpa [#allocation5], 1 }
  0x70   :  { %415 = vsyncpa [#allocation5 + $0x1], 1 }

</bundles_post_ra>
